<compile_context>
chip_gen: v6e
topology: v6e:2x2x1
jax: 0.10.0
libtpu: 0.0.40
codegen_flags: <defaults>
</compile_context>

<pallas_src>
import functools

import jax
import jax.numpy as jnp
from jax.experimental import pallas as pl
from jax.experimental.pallas import tpu as pltpu


def _iou_kernel(preds_ref, labels_ref, inter_ref, union_ref,
                acc_inter_ref, acc_sum_ref, *, ignore: int):
    # preds_ref : (1, C, tS)  input dtype (upcast to f32 in-kernel)
    # labels_ref: (1, 1, tS)  int32
    # inter_ref : (1, C, 1)   float32   (written only on the last S tile)
    # union_ref : (1, C, 1)   float32
    # acc_*_ref : (1, C, tS)  float32 VMEM scratch accumulators
    k = pl.program_id(1)

    @pl.when(k == 0)
    def _init():
        acc_inter_ref[...] = jnp.zeros_like(acc_inter_ref)
        acc_sum_ref[...] = jnp.zeros_like(acc_sum_ref)

    x = preds_ref[...].astype(jnp.float32)                 # (1, C, tS)
    _, C, tS = x.shape

    # Channel softmax over the sublane (C) axis -- matches torch softmax(dim=1).
    m = jnp.max(x, axis=1, keepdims=True)                  # (1, 1, tS)
    e = jnp.exp(x - m)                                     # (1, C, tS)
    denom = jnp.sum(e, axis=1, keepdims=True)              # (1, 1, tS)
    probs = e * pl.reciprocal(denom, approx=True)          # EUP reciprocal

    labels = labels_ref[...]                               # (1, 1, tS) int32
    valid = labels != ignore                               # (1, 1, tS) bool
    class_ids = jax.lax.broadcasted_iota(jnp.int32, (1, C, tS), 1)
    one_hot_m = jnp.logical_and(labels == class_ids, valid).astype(jnp.float32)
    probs_m = probs * valid.astype(jnp.float32)            # mask broadcasts over C

    # Wide VPU accumulation; the lane (XLU) reduce is deferred to finalize.
    acc_inter_ref[...] += probs_m * one_hot_m
    acc_sum_ref[...] += probs_m + one_hot_m

    @pl.when(k == pl.num_programs(1) - 1)
    def _finalize():
        inter = jnp.sum(acc_inter_ref[...], axis=-1, keepdims=True)   # (1, C, 1)
        total = jnp.sum(acc_sum_ref[...], axis=-1, keepdims=True)     # (1, C, 1)
        inter_ref[...] = inter
        union_ref[...] = total - inter


def iou_loss(preds: jax.Array, labels: jax.Array, ignore: int = -1,
             *, max_spatial_tile: int = 16384) -> jax.Array:
    """preds: (N, C, H, W) float; labels: (N, H, W) int. Returns scalar loss."""
    N, C, H, W = preds.shape
    S = H * W

    # Free reshapes (NCHW-native); no HBM transpose pass.
    p = preds.reshape(N, C, S)
    l = labels.reshape(N, 1, S).astype(jnp.int32)

    # Spatial tile: multiple of 128 lanes, capped so double-buffered blocks +
    # scratch stay well under the scoped VMEM limit on v5e/v6e/v7x.
    s128 = ((S + 127) // 128) * 128
    tS = min(s128, max_spatial_tile)
    S_pad = ((S + tS - 1) // tS) * tS
    if S_pad != S:
        # Padded pixels are labeled `ignore`, so the in-kernel mask zeroes them
        # out of both accumulators (remainder-tile correctness).
        p = jnp.pad(p, ((0, 0), (0, 0), (0, S_pad - S)))
        l = jnp.pad(l, ((0, 0), (0, 0), (0, S_pad - S)),
                    constant_values=int(ignore))
    num_s = S_pad // tS

    kernel = functools.partial(_iou_kernel, ignore=int(ignore))

    inter, union = pl.pallas_call(
        kernel,
        out_shape=(
            jax.ShapeDtypeStruct((N, C, 1), jnp.float32),
            jax.ShapeDtypeStruct((N, C, 1), jnp.float32),
        ),
        grid_spec=pltpu.PrefetchScalarGridSpec(
            num_scalar_prefetch=0,
            grid=(N, num_s),
            in_specs=[
                pl.BlockSpec((1, C, tS), lambda n, k: (n, 0, k)),
                pl.BlockSpec((1, 1, tS), lambda n, k: (n, 0, k)),
            ],
            out_specs=(
                pl.BlockSpec((1, C, 1), lambda n, k: (n, 0, 0)),
                pl.BlockSpec((1, C, 1), lambda n, k: (n, 0, 0)),
            ),
            scratch_shapes=[
                pltpu.VMEM((1, C, tS), jnp.float32),
                pltpu.VMEM((1, C, tS), jnp.float32),
            ],
        ),
        compiler_params=pltpu.CompilerParams(
            dimension_semantics=("parallel", "arbitrary"),
            vmem_limit_bytes=32 * 1024 * 1024,
        ),
    )(p, l)

    inter = inter.reshape(N, C)
    union = union.reshape(N, C)
    iou = inter / jnp.maximum(union, 1e-6)   # torch .clamp(min=1e-6)
    return 1.0 - jnp.mean(iou)


def _reference_iou_loss(preds, labels, ignore=-1):
    # Pure-JAX reference mirroring the PyTorch module.
    N, C, H, W = preds.shape
    probs = jax.nn.softmax(preds.astype(jnp.float32), axis=1)            # (N,C,H,W)
    one_hot = jax.nn.one_hot(labels, C, dtype=jnp.float32)               # (N,H,W,C)
    one_hot = jnp.transpose(one_hot, (0, 3, 1, 2))                       # (N,C,H,W)
    mask = (labels != ignore)[:, None, :, :].astype(jnp.float32)
    probs = probs * mask
    one_hot = one_hot * mask
    intersection = jnp.sum(probs * one_hot, axis=(2, 3))
    union = jnp.sum(probs + one_hot, axis=(2, 3)) - intersection
    iou = intersection / jnp.maximum(union, 1e-6)
    return 1.0 - jnp.mean(iou)


if __name__ == "__main__":
    key = jax.random.PRNGKey(0)
    k1, k2, k3 = jax.random.split(key, 3)

    # Main case: N=2, C=4, 16x16 spatial, with some ignore (-1) pixels.
    N, C, H, W = 2, 4, 16, 16
    preds = jax.random.normal(k1, (N, C, H, W), dtype=jnp.float32)
    labels = jax.random.randint(k2, (N, H, W), 0, C, dtype=jnp.int32)
    ignore_mask = jax.random.bernoulli(k3, 0.1, (N, H, W))
    labels = jnp.where(ignore_mask, -1, labels)

    loss = jax.block_until_ready(iou_loss(preds, labels, ignore=-1))
    ref = jax.block_until_ready(_reference_iou_loss(preds, labels, ignore=-1))
    # Tolerance accounts for the approximate EUP reciprocal in the softmax.
    assert jnp.allclose(loss, ref, atol=1e-3, rtol=1e-3), (loss, ref)

    # Second tiny case exercising the spatial-padding / remainder-mask path
    # (S = 9*14 = 126, padded to one 128-lane tile).
    k4, k5 = jax.random.split(k3)
    preds2 = jax.random.normal(k4, (1, 3, 9, 14), dtype=jnp.float32)
    labels2 = jax.random.randint(k5, (1, 9, 14), 0, 3, dtype=jnp.int32)
    loss2 = jax.block_until_ready(iou_loss(preds2, labels2, ignore=-1))
    ref2 = jax.block_until_ready(_reference_iou_loss(preds2, labels2, ignore=-1))
    assert jnp.allclose(loss2, ref2, atol=1e-3, rtol=1e-3), (loss2, ref2)

    print("KERNEL_OK")
</pallas_src>

<mosaic_0001>
module attributes {stable_mosaic.version = 11 : i64} {
  func.func @_iou_kernel(%arg0: i32, %arg1: i32, %arg2: memref<1x4x256xf32, #tpu.memory_space<vmem>>, %arg3: memref<1x1x256xi32, #tpu.memory_space<vmem>>, %arg4: memref<1x4x1xf32, #tpu.memory_space<vmem>>, %arg5: memref<1x4x1xf32, #tpu.memory_space<vmem>>, %arg6: memref<1x4x256xf32, #tpu.memory_space<vmem>>, %arg7: memref<1x4x256xf32, #tpu.memory_space<vmem>>) attributes {dimension_semantics = [#tpu.dimension_semantics<parallel>, #tpu.dimension_semantics<arbitrary>], iteration_bounds = array<i64: 2, 1>, scalar_prefetch = 0 : i64, scratch_operands = 2 : i64, tpu.core_type = #tpu.core_type<tc>, window_params = [{transform_indices = @transform_0, window_bounds = array<i64: 1, 4, 256>}, {transform_indices = @transform_1, window_bounds = array<i64: 1, 1, 256>}, {transform_indices = @transform_2, window_bounds = array<i64: 1, 4, 1>}, {transform_indices = @transform_3, window_bounds = array<i64: 1, 4, 1>}]} {
    %c0_i32 = arith.constant 0 : i32
    %0 = arith.cmpi eq, %arg1, %c0_i32 : i32
    %1 = arith.extui %0 : i1 to i32
    %c0_i32_0 = arith.constant 0 : i32
    %2 = arith.cmpi ne, %1, %c0_i32_0 : i32
    scf.if %2 {
      %cst_21 = arith.constant 0.000000e+00 : f32
      %39 = vector.broadcast %cst_21 : f32 to vector<1x4x256xf32>
      %c0_22 = arith.constant 0 : index
      %c0_23 = arith.constant 0 : index
      %c0_24 = arith.constant 0 : index
      %40 = vector.load %arg6[%c0_22, %c0_23, %c0_24] : memref<1x4x256xf32, #tpu.memory_space<vmem>>, vector<1x4x256xf32>
      tpu.vector_store %arg6[%c0_22, %c0_23, %c0_24], %39 {strides = array<i32>} : memref<1x4x256xf32, #tpu.memory_space<vmem>>, vector<1x4x256xf32>,
      %cst_25 = arith.constant 0.000000e+00 : f32
      %41 = vector.broadcast %cst_25 : f32 to vector<1x4x256xf32>
      %c0_26 = arith.constant 0 : index
      %c0_27 = arith.constant 0 : index
      %c0_28 = arith.constant 0 : index
      %42 = vector.load %arg7[%c0_26, %c0_27, %c0_28] : memref<1x4x256xf32, #tpu.memory_space<vmem>>, vector<1x4x256xf32>
      tpu.vector_store %arg7[%c0_26, %c0_27, %c0_28], %41 {strides = array<i32>} : memref<1x4x256xf32, #tpu.memory_space<vmem>>, vector<1x4x256xf32>,
    } else {
    }
    %c0 = arith.constant 0 : index
    %c0_1 = arith.constant 0 : index
    %c0_2 = arith.constant 0 : index
    %3 = vector.load %arg2[%c0, %c0_1, %c0_2] : memref<1x4x256xf32, #tpu.memory_space<vmem>>, vector<1x4x256xf32>
    %cst = arith.constant dense<0xFF800000> : vector<1x256xf32>
    %4 = vector.multi_reduction <maximumf>, %3, %cst [1] : vector<1x4x256xf32> to vector<1x256xf32>
    %5 = vector.shape_cast %4 : vector<1x256xf32> to vector<1x1x256xf32>
    %6 = vector.broadcast %5 : vector<1x1x256xf32> to vector<1x4x256xf32>
    %7 = arith.subf %3, %6 : vector<1x4x256xf32>
    %8 = math.exp %7 : vector<1x4x256xf32>
    %cst_3 = arith.constant dense<0.000000e+00> : vector<1x256xf32>
    %9 = vector.multi_reduction <add>, %8, %cst_3 [1] : vector<1x4x256xf32> to vector<1x256xf32>
    %10 = vector.shape_cast %9 : vector<1x256xf32> to vector<1x1x256xf32>
    %11 = tpu.reciprocal %10 {approx = true} : vector<1x1x256xf32> -> vector<1x1x256xf32>
    %12 = vector.broadcast %11 : vector<1x1x256xf32> to vector<1x4x256xf32>
    %13 = arith.mulf %8, %12 : vector<1x4x256xf32>
    %c0_4 = arith.constant 0 : index
    %c0_5 = arith.constant 0 : index
    %c0_6 = arith.constant 0 : index
    %14 = vector.load %arg3[%c0_4, %c0_5, %c0_6] : memref<1x1x256xi32, #tpu.memory_space<vmem>>, vector<1x1x256xi32>
    %c-1_i32 = arith.constant -1 : i32
    %15 = vector.broadcast %c-1_i32 : i32 to vector<1x1x256xi32>
    %16 = arith.cmpi ne, %14, %15 : vector<1x1x256xi32>
    %17 = tpu.iota {dimensions = array<i32: 1>} : vector<1x4x256xi32>
    %18 = vector.broadcast %14 : vector<1x1x256xi32> to vector<1x4x256xi32>
    %19 = arith.cmpi eq, %18, %17 : vector<1x4x256xi32>
    %20 = vector.broadcast %16 : vector<1x1x256xi1> to vector<1x4x256xi1>
    %21 = arith.andi %19, %20 : vector<1x4x256xi1>
    %22 = arith.extui %21 : vector<1x4x256xi1> to vector<1x4x256xi32>
    %23 = arith.sitofp %22 : vector<1x4x256xi32> to vector<1x4x256xf32>
    %24 = arith.extui %16 : vector<1x1x256xi1> to vector<1x1x256xi32>
    %25 = arith.sitofp %24 : vector<1x1x256xi32> to vector<1x1x256xf32>
    %26 = vector.broadcast %25 : vector<1x1x256xf32> to vector<1x4x256xf32>
    %27 = arith.mulf %13, %26 : vector<1x4x256xf32>
    %c0_7 = arith.constant 0 : index
    %c0_8 = arith.constant 0 : index
    %c0_9 = arith.constant 0 : index
    %28 = vector.load %arg6[%c0_7, %c0_8, %c0_9] : memref<1x4x256xf32, #tpu.memory_space<vmem>>, vector<1x4x256xf32>
    %29 = arith.mulf %27, %23 : vector<1x4x256xf32>
    %30 = arith.addf %28, %29 : vector<1x4x256xf32>
    %c0_10 = arith.constant 0 : index
    %c0_11 = arith.constant 0 : index
    %c0_12 = arith.constant 0 : index
    %31 = vector.load %arg6[%c0_10, %c0_11, %c0_12] : memref<1x4x256xf32, #tpu.memory_space<vmem>>, vector<1x4x256xf32>
    tpu.vector_store %arg6[%c0_10, %c0_11, %c0_12], %30 {strides = array<i32>} : memref<1x4x256xf32, #tpu.memory_space<vmem>>, vector<1x4x256xf32>,
    %c0_13 = arith.constant 0 : index
    %c0_14 = arith.constant 0 : index
    %c0_15 = arith.constant 0 : index
    %32 = vector.load %arg7[%c0_13, %c0_14, %c0_15] : memref<1x4x256xf32, #tpu.memory_space<vmem>>, vector<1x4x256xf32>
    %33 = arith.addf %27, %23 : vector<1x4x256xf32>
    %34 = arith.addf %32, %33 : vector<1x4x256xf32>
    %c0_16 = arith.constant 0 : index
    %c0_17 = arith.constant 0 : index
    %c0_18 = arith.constant 0 : index
    %35 = vector.load %arg7[%c0_16, %c0_17, %c0_18] : memref<1x4x256xf32, #tpu.memory_space<vmem>>, vector<1x4x256xf32>
    tpu.vector_store %arg7[%c0_16, %c0_17, %c0_18], %34 {strides = array<i32>} : memref<1x4x256xf32, #tpu.memory_space<vmem>>, vector<1x4x256xf32>,
    %c0_i32_19 = arith.constant 0 : i32
    %36 = arith.cmpi eq, %arg1, %c0_i32_19 : i32
    %37 = arith.extui %36 : i1 to i32
    %c0_i32_20 = arith.constant 0 : i32
    %38 = arith.cmpi ne, %37, %c0_i32_20 : i32
    scf.if %38 {
      %c0_21 = arith.constant 0 : index
      %c0_22 = arith.constant 0 : index
      %c0_23 = arith.constant 0 : index
      %39 = vector.load %arg6[%c0_21, %c0_22, %c0_23] : memref<1x4x256xf32, #tpu.memory_space<vmem>>, vector<1x4x256xf32>
      %cst_24 = arith.constant dense<0.000000e+00> : vector<1x4xf32>
      %40 = vector.multi_reduction <add>, %39, %cst_24 [2] : vector<1x4x256xf32> to vector<1x4xf32>
      %41 = vector.shape_cast %40 : vector<1x4xf32> to vector<1x4x1xf32>
      %c0_25 = arith.constant 0 : index
      %c0_26 = arith.constant 0 : index
      %c0_27 = arith.constant 0 : index
      %42 = vector.load %arg7[%c0_25, %c0_26, %c0_27] : memref<1x4x256xf32, #tpu.memory_space<vmem>>, vector<1x4x256xf32>
      %cst_28 = arith.constant dense<0.000000e+00> : vector<1x4xf32>
      %43 = vector.multi_reduction <add>, %42, %cst_28 [2] : vector<1x4x256xf32> to vector<1x4xf32>
      %44 = vector.shape_cast %43 : vector<1x4xf32> to vector<1x4x1xf32>
      %c0_29 = arith.constant 0 : index
      %c0_30 = arith.constant 0 : index
      %c0_31 = arith.constant 0 : index
      %45 = vector.load %arg4[%c0_29, %c0_30, %c0_31] : memref<1x4x1xf32, #tpu.memory_space<vmem>>, vector<1x4x1xf32>
      tpu.vector_store %arg4[%c0_29, %c0_30, %c0_31], %41 {strides = array<i32>} : memref<1x4x1xf32, #tpu.memory_space<vmem>>, vector<1x4x1xf32>,
      %46 = arith.subf %44, %41 : vector<1x4x1xf32>
      %c0_32 = arith.constant 0 : index
      %c0_33 = arith.constant 0 : index
      %c0_34 = arith.constant 0 : index
      %47 = vector.load %arg5[%c0_32, %c0_33, %c0_34] : memref<1x4x1xf32, #tpu.memory_space<vmem>>, vector<1x4x1xf32>
      tpu.vector_store %arg5[%c0_32, %c0_33, %c0_34], %46 {strides = array<i32>} : memref<1x4x1xf32, #tpu.memory_space<vmem>>, vector<1x4x1xf32>,
    } else {
    }
    return
  }
  func.func @transform_0(%arg0: i32, %arg1: i32) -> (i32, i32, i32) {
    %c0_i32 = arith.constant 0 : i32
    %c0_i32_0 = arith.constant 0 : i32
    return %arg0, %c0_i32, %arg1 : i32, i32, i32
  }
  func.func @transform_1(%arg0: i32, %arg1: i32) -> (i32, i32, i32) {
    %c0_i32 = arith.constant 0 : i32
    %c0_i32_0 = arith.constant 0 : i32
    return %arg0, %c0_i32, %arg1 : i32, i32, i32
  }
  func.func @transform_2(%arg0: i32, %arg1: i32) -> (i32, i32, i32) {
    %c0_i32 = arith.constant 0 : i32
    %c0_i32_0 = arith.constant 0 : i32
    %c0_i32_1 = arith.constant 0 : i32
    return %arg0, %c0_i32, %c0_i32_0 : i32, i32, i32
  }
  func.func @transform_3(%arg0: i32, %arg1: i32) -> (i32, i32, i32) {
    %c0_i32 = arith.constant 0 : i32
    %c0_i32_0 = arith.constant 0 : i32
    %c0_i32_1 = arith.constant 0 : i32
    return %arg0, %c0_i32, %c0_i32_0 : i32, i32, i32
  }
}

</mosaic_0001>

<bundles_post_ra>
// kernel: tpu_custom_call.1
= control target key start
LH: loop header
LB: loop body
LE: loop exit
PB: predicated region body
PF: predicated region fallthrough
CT: control target
= control target key end

     0   :  { %9 = vsyncpa [#allocation5], 0  ;;  %s899_s0 = inlined_call_operand.hbm [shape: f32[2,4,256], index: 0, kind: input, shape index: {}]   ;;  %s900_s1 = inlined_call_operand.hbm [shape: s32[2,1,256], index: 1, kind: input, shape index: {}]   ;;  %s901_s2 = inlined_call_operand.vmem [shape: f32[2,4,1], index: 2, kind: output, shape index: {0}]   ;;  %s902_s3 = inlined_call_operand.vmem [shape: f32[2,4,1], index: 3, kind: output, shape index: {1}]  }
   0x1   :  { %11 = vsyncpa [#allocation5 + $0x1], 0 }
   0x2   :  { %12 = vsyncpa [#allocation7], 0 }
   0x3   :  { %14 = vsyncpa [#allocation7 + $0x1], 0  ;;  %s755_s12 = smov 0   ;;  %s757_s13 = smov 0  }
   0x4   :  { %s759_s14 = smov 0   ;;  %s761_s15 = smov 0  }
   0x5   :  { %s763_s16 = smov 0   ;;  %s765_s17 = smov 0  }
   0x6 LB: > { %s528_s18 = sadd.s32 4294967295, %s729_s17   ;;  %s32_s19 = sadd.s32 1, %s725_s16  ;;  %s729_s17 = sphi %s765_s17, %s20_s17   ;;  %s725_s16 = sphi %s763_s16, %s911_s16   ;;  %s721_s15 = sphi %s761_s15, %s910_s15   ;;  %s717_s14 = sphi %s759_s14, %s909_s14   ;;  %s713_s13 = sphi %s757_s13, %s908_s13   ;;  %s709_s12 = sphi %s755_s12, %s907_s12  }
   0x7   : > { %p34_p0 = scmp.ge.s32.totalorder %s32_s19, 2  ;;  %s41_s20 = sadd.s32 1, %s717_s14 }
   0x8   : > { %p48_p1 = scmp.ne.s32.totalorder %s717_s14, %s713_s13  ;;  %p49_p2 = scmp.eq.s32.totalorder %s729_s17, 0 }
   0x9   : > { %s913_s19 = smov (%p34_p0, %s32_s19), 0  ;;  %p54_p4 = scmp.ne.s32.totalorder %s713_s13, %s709_s12 }
   0xa   : > { %p791_p3 = por %p49_p2, %p48_p1  ;;  %s36_s22 = ssub.s32 %s725_s16, %s913_s19 }
   0xb   : > { %p55_p5 = scmp.eq.s32.totalorder %s528_s18, 0  ;;  %p39_p6 = scmp.eq.s32.totalorder %s36_s22, 0 }
   0xc   : > { %p561_p8 = scmp.lt.s32.totalorder %s729_s17, 2  ;;  %s807_s25 = sand.u32 1, %s717_s14  }
   0xd   : > { %p798_p7 = por %p55_p5, %p54_p4  ;;  %s548_s26 = sshll.u32 %s725_s16, 7 }
   0xe   : > { %s804_s24 = scalar_select %p39_p6, %s717_s14, %s41_s20  }
   0xf   : > { %s532_s27 = sshll.u32 %s807_s25, 3  ;;  %s170_s30 = scalar_lea.hbm %s899_s0, %s548_s26 }
  0x10   : > { %s162_s4 = scalar_lea.vmem [#allocation4], %s532_s27  ;;  %p816_p9 = pnand %p561_p8, %p791_p3 }
  0x11   : > { %s172_s5 = sshll.u32 %s162_s4, 4  ;;  %p538_p10 = scmp.ge.s32.totalorder %s729_s17, 1  ;;  %s173_s5 = int_to_ptr.vmem [resolvable:$true] %s172_s5 }
  0x12   : > { %p198_p11 = scmp.lt.s32.totalorder %s729_s17, 3  ;;  %s159_s7 = scalar_lea.sflag [#allocation5], %s807_s25 }
  0x13   : > { %p621_p12 = pneg %p816_p9  ;;  %s632_s8 = scalar_lea.vmem %s173_s5, 128 }
  0x14   : > { %p633_p13 = scmp.ne.s32.totalorder %s173_s5, %s632_s8  ;;  %s731_s9 = smov [#allocation4]  }
  0x15   : > { %s637_s10 = sshll.u32 %s731_s9, 4  ;;  %s638_s10 = int_to_ptr.vmem [resolvable:$false] %s637_s10 }
  0x16   : > { %p635_p0 = pnand %p633_p13, %p621_p12  ;;  %s639_s11 = scalar_lea.vmem %s638_s10, 256 }
  0x17   : > { %p640_p2 = scmp.lt.s32.totalorder %s173_s5, %s638_s10  ;;  %p641_p3 = scmp.lt.s32.totalorder %s639_s11, %s632_s8 }
  0x18   : > { %p636_p1 = pneg %p635_p0 }
  0x19   : > { %p642_p4 = por %p641_p3, %p640_p2 }
  0x1b   : > { %p643_p5 = pnand %p642_p4, %p636_p1 }
  0x1d   : > { %646 = shalt.err (!%p643_p5)
}
  0x1e   : > { %557 = dma.hbm_to_vmem [thread:$0]  (!%p816_p9), %s170_s30, 128, %s173_s5, %s159_s7  }
  0x1f   : > { %p834_p6 = pnand %p538_p10, %p198_p11  ;;  %s535_s18 = sshll.u32 %s807_s25, 1 }
  0x20   : > { %s549_s20 = sshll.u32 %s725_s16, 5  ;;  %s183_s27 = scalar_lea.vmem [#allocation6], %s535_s18 }
  0x21   : > { %s191_s26 = scalar_lea.hbm %s900_s1, %s549_s20  ;;  %s193_s28 = sshll.u32 %s183_s27, 4  ;;  %s194_s28 = int_to_ptr.vmem [resolvable:$true] %s193_s28 }
  0x22   : > { %s180_s29 = scalar_lea.sflag [#allocation7], %s807_s25  ;;  %s660_s4 = scalar_lea.vmem %s194_s28, 32 }
  0x23   : > { %p661_p8 = scmp.ne.s32.totalorder %s194_s28, %s660_s4  ;;  %s732_s30 = smov [#allocation6]  }
  0x24   : > { %s665_s5 = sshll.u32 %s732_s30, 4  ;;  %s666_s5 = int_to_ptr.vmem [resolvable:$false] %s665_s5 }
  0x25   : > { %p663_p13 = pnand %p661_p8, %p621_p12  ;;  %s667_s7 = scalar_lea.vmem %s666_s5, 64 }
  0x26   : > { %p668_p10 = scmp.lt.s32.totalorder %s194_s28, %s666_s5  ;;  %p669_p11 = scmp.lt.s32.totalorder %s667_s7, %s660_s4 }
  0x27   : > { %p664_p0 = pneg %p663_p13 }
  0x28   : > { %p670_p1 = por %p669_p11, %p668_p10 }
  0x2a   : > { %p671_p2 = pnand %p670_p1, %p664_p0 }
  0x2c   : > { %674 = shalt.err (!%p671_p2)
}
  0x2d   : > { %560 = dma.hbm_to_vmem [thread:$0]  (!%p816_p9), %s191_s26, 32, %s194_s28, %s180_s29  }
  0x2e   : > { %202 = sbr.rel (%p834_p6) target bundleno = 278 (0x116), region = 28  ;;  %s204_s25 = sand.u32 (!%p834_p6), 1, %s713_s13  }
  0x2f   : > { %s539_s8 = sshll.u32 (!%p834_p6), %s204_s25, 3  ;;  %s205_s9 = scalar_lea.sflag (!%p834_p6), [#allocation5], %s204_s25 }
  0x30   : > { %s208_s10 = scalar_lea.vmem (!%p834_p6), [#allocation4], %s539_s8 }
  0x33   : > { %700 = dma.done.wait (%p798_p7), %s205_s9, 128  }
  0x34   : > { %702 = vsyncadd (%p798_p7), %s205_s9, 4294967168  ;;  %s540_s11 = sshll.u32 %s204_s25, 1  ;;  %s214_s18 = scalar_lea.sflag [#allocation7], %s204_s25 }
  0x35   : > { %s856_s20 = scalar_lea.vmem [#allocation6], %s540_s11 }
  0x36   : > { %704 = dma.done.wait (%p798_p7), %s214_s18, 32  }
  0x37   : > { %706 = vsyncadd (%p798_p7), %s214_s18, 4294967264  ;;  %vm268_vm0 = vcmask 1043456   ;;  %v264_v0 = vld [vmem:[%s208_s10] sm:$0xff]  ;;  %v316_v28 = vlaneseq  ;;  %v314_v31 = vld [vmem:[%s856_s20] sm:$0x3]  ;;  %v733_v40 = vmov 0  }
  0x38   : > { %v266_v1 = vcombine.high %v264_v0, %v264_v0  ;;  %v269_v2 = vsel %vm268_vm0, %v264_v0, -inf  ;;  %vm315_vm1 = vcmp.ne.s32.totalorder %v314_v31, 4294967295  ;;  %v734_v46 = vmov 0.0   ;;  %p250_p7 = scmp.lt.s32.totalorder %s721_s15, 1 }
  0x39   : > { %v270_v3 = vrot.slane %v269_v2, 4  ;;  %v317_v34 = vshrl.u32 %v316_v28, 7  ;;  %v328_v41 = vsel %vm315_vm1, 1, %v733_v40  ;;  %v545_v47 = vsel %vm315_vm1, 1.0, %v734_v46 }
  0x3a   : > { %v276_v4 = vsel %vm268_vm0, %v266_v1, -inf  ;;  %s915_s15 = smov (!%p250_p7, %s721_s15), 1  ;;  %vm391_vm8 = vcmask 3072  }
  0x3b   : > { %v271_v5 = vmax.f32 %v269_v2, %v270_v3  ;;  %v277_v6 = vrot.slane %v276_v4, 4  ;;  %v320_v38 = vsub.s32 0, %v317_v34  ;;  %v324_v39 = vsub.s32 1, %v317_v34  ;;  %s541_s23 = sshll.u32 %s915_s15, 2 }
  0x3c   : > { %s253_s21 = scalar_lea.vmem %s901_s2, %s541_s23  ;;  %s257_s27 = scalar_lea.vmem %s902_s3, %s541_s23 }
  0x3d   : > { %v272_v7 = vrot.slane %v271_v5, 2  ;;  %v278_v8 = vmax.f32 %v276_v4, %v277_v6  ;;  %v321_v42 = vrot.slane %v314_v31, %v320_v38  ;;  %v332_v43 = vrot.slane %v328_v41, %v320_v38 }
  0x3e   : > { %v325_v44 = vrot.slane %v314_v31, %v324_v39  ;;  %v336_v45 = vrot.slane %v328_v41, %v324_v39  ;;  %v350_v48 = vrot.slane %v545_v47, %v320_v38  ;;  %v354_v49 = vrot.slane %v545_v47, %v324_v39 }
  0x3f   : > { %v273_v9 = vmax.f32 %v271_v5, %v272_v7  ;;  %v279_v10 = vrot.slane %v278_v8, 2  ;;  %vm326_vm2 = vcmp.eq.s32.totalorder %v321_v42, %v317_v34  ;;  %vm337_vm3 = vcmp.eq.s32.totalorder %v332_v43, 1 }
  0x40   : > { %vm327_vm4 = vcmp.eq.s32.totalorder %v325_v44, %v317_v34  ;;  %vm338_vm5 = vcmp.eq.s32.totalorder %v336_v45, 1  ;;  %vm339_vm6 = vmand %vm326_vm2, %vm337_vm3  ;;  %v355_v55 = vcombine.low %v350_v48, %v354_v49 }
  0x41   : > { %v274_v11 = vrot.slane %v273_v9, 1  ;;  %v280_v12 = vmax.f32 %v278_v8, %v279_v10  ;;  %vm340_vm7 = vmand %vm327_vm4, %vm338_vm5  ;;  %v543_v52 = vsel %vm339_vm6, 1.0, %v734_v46 }
  0x42   : > { %v544_v53 = vsel %vm340_vm7, 1.0, %v734_v46 }
  0x43   : > { %v275_v13 = vmax.f32 %v273_v9, %v274_v11  ;;  %v281_v14 = vrot.slane %v280_v12, 1  ;;  %v361_v57 = vcombine.low %v543_v52, %v544_v53 }
  0x45   : > { %v282_v15 = vmax.f32 %v280_v12, %v281_v14 }
  0x47   : > { %v285_v16 = vcombine.low %v275_v13, %v282_v15 }
  0x49   : > { %v287_v17 = vsub.f32 %v264_v0, %v285_v16 }
  0x4b   : > { %v288_v18 = vmul.f32 1.442695, %v287_v17 }
  0x4d   : > { %613 = vpow2.f32 %v288_v18 }
  0x5a   : > { %v614_v19 = vpop.eup %613 }
  0x5b   : > { %v291_v20 = vcombine.high %v614_v19, %v614_v19  ;;  %v293_v21 = vsel %vm268_vm0, %v614_v19, 0.0 }
  0x5c   : > { %v294_v22 = vrot.slane %v293_v21, 4 }
  0x5d   : > { %v300_v23 = vsel %vm268_vm0, %v291_v20, 0.0 }
  0x5e   : > { %v295_v24 = vadd.f32 %v294_v22, %v293_v21  ;;  %v301_v25 = vrot.slane %v300_v23, 4 }
  0x60   : > { %v296_v26 = vrot.slane %v295_v24, 2  ;;  %v302_v27 = vadd.f32 %v301_v25, %v300_v23 }
  0x62   : > { %v297_v29 = vadd.f32 %v296_v26, %v295_v24  ;;  %v303_v30 = vrot.slane %v302_v27, 2 }
  0x64   : > { %v298_v32 = vrot.slane %v297_v29, 1  ;;  %v304_v33 = vadd.f32 %v303_v30, %v302_v27 }
  0x66   : > { %v299_v35 = vadd.f32 %v298_v32, %v297_v29  ;;  %v305_v36 = vrot.slane %v304_v33, 1 }
  0x68   : > { %v306_v37 = vadd.f32 %v305_v36, %v304_v33  ;;  %615 = vrcp.f32 %v299_v35 }
  0x6a   : > { %617 = vrcp.f32 %v306_v37 }
  0x75   : > { %v616_v50 = vpop.eup %615 }
  0x77   : > { %v618_v51 = vpop.eup %617 }
  0x78   : > { %v311_v54 = vcombine.low %v616_v50, %v618_v51 }
  0x7a   : > { %v313_v56 = vmul.f32 %v614_v19, %v311_v54 }
  0x7c   : > { %v357_v58 = vmul.f32 %v355_v55, %v313_v56 }
  0x7e   : > { %v363_v59 = vmul.f32 %v361_v57, %v357_v58  ;;  %v367_v60 = vadd.f32 %v361_v57, %v357_v58 }
  0x80   : > { %v375_v61 = vcombine.high %v363_v59, %v363_v59  ;;  %v377_v62 = vsel %vm268_vm0, %v363_v59, 0.0  ;;  %v384_v63 = vcombine.high %v367_v60, %v367_v60  ;;  %v386_v1 = vsel %vm268_vm0, %v367_v60, 0.0 }
  0x82   : > { %v378_v0 = vsel %vm268_vm0, %v375_v61, 0.0  ;;  %v387_v2 = vsel %vm268_vm0, %v384_v63, 0.0 }
  0x83   : > { %v379_v3 = vadd.f32 %v378_v0, %v377_v62  ;;  %v388_v4 = vadd.f32 %v387_v2, %v386_v1 }
  0x85   : > { %380 = vadd.xlane.f32.xlu0 %v379_v3 }
  0x89   : > { %389 = vadd.xlane.f32.xlu0 %v388_v4 }
 0x10e   : > { %v381_v5 = vpop.xlane.xlu0 %380 }
 0x10f   : > { %392 = vst.msk [vmem:[%s253_s21] sm:$0xf] %vm391_vm8, %v381_v5 }
 0x112   : > { %v390_v6 = vpop.xlane.xlu0 %389 }
 0x113   : > { %v393_v7 = vsub.f32 %v390_v6, %v381_v5 }
 0x115   : > { %394 = vst.msk [vmem:[%s257_s27] sm:$0xf] %vm391_vm8, %v393_v7 }
 0x116 PF: > { %s20_s17 = sadd.s32 1, %s729_s17   ;;  %s907_s12 = smov %s713_s13 }
 0x117   : > { %p17_p9 = scmp.ge.s32.totalorder %s20_s17, 4   ;;  %s908_s13 = smov %s717_s14 }
 0x118   : > { %s909_s14 = smov %s804_s24  ;;  %s910_s15 = smov %s725_s16 }
 0x119   : > { %s911_s16 = smov %s913_s19  ;;  %19 = sbr.rel (!%p17_p9) target bundleno = 6 (0x6), region = 101 }
 0x11e   :  { %428 = vsyncpa [#allocation5], 1 }
 0x11f   :  { %430 = vsyncpa [#allocation5 + $0x1], 1 }
 0x120   :  { %431 = vsyncpa [#allocation7], 1 }
 0x121   :  { %433 = vsyncpa [#allocation7 + $0x1], 1 }

</bundles_post_ra>
